<compile_context>
chip_gen: v7x
topology: tpu7x:2x2x1
jax: 0.10.0
libtpu: 0.0.40
codegen_flags: <defaults>
</compile_context>

<pallas_src>
import math

import jax
import jax.numpy as jnp
from jax.experimental import pallas as pl
from jax.experimental.pallas import tpu as pltpu


# ---------------------------------------------------------------------------
# Fused, streamed Pallas kernel: per-hw-chunk conv (im2col matmul) + bias + ReLU
# + head contribution, accumulated into the resident logits block.
# ---------------------------------------------------------------------------
def fused_cnn_kernel(p_ref, w_ref, b_ref, wh_ref, o_ref):
    """
    p_ref:  [HWs*Npad, Kp]   bf16  im2col patches for this step's hw chunk
                                   (rows ordered hw-major, n-minor)
    w_ref:  [Kp, Cout]       bf16  conv weight (zero-padded along Kp), resident
    b_ref:  [1, Cout]        f32   conv bias, resident
    wh_ref: [HWs*Cout, Jp]   bf16  head-weight K-chunk (hw-major, class dim padded)
    o_ref:  [Npad, Jp]       f32   logits accumulator (same block every step)
    """
    step = pl.program_id(0)
    npad = o_ref.shape[0]
    cout = w_ref.shape[1]
    hw_per_step = wh_ref.shape[0] // cout

    @pl.when(step == 0)
    def _():
        o_ref[...] = jnp.zeros_like(o_ref)

    # Conv for this chunk: one MXU matmul (bf16 in, f32 acc), bias, ReLU, then a
    # single bulk f32->bf16 pack for the head dots.
    conv = jnp.dot(p_ref[...], w_ref[...], preferred_element_type=jnp.float32)
    conv = jnp.maximum(conv + b_ref[...], 0.0).astype(jnp.bfloat16)

    # Head contribution: per-hw [Npad, Cout] @ [Cout, Jp] dots.  All slices are
    # static and sublane-tile aligned (Npad = 16, Cout = 128) — no relayout, no
    # masked stores; this replaces the old flatten copy loop entirely.
    acc = jnp.zeros(o_ref.shape, jnp.float32)
    for l in range(hw_per_step):
        acc += jnp.dot(conv[l * npad:(l + 1) * npad, :],
                       wh_ref[l * cout:(l + 1) * cout, :],
                       preferred_element_type=jnp.float32)
    o_ref[...] += acc


# ---------------------------------------------------------------------------
# Wrappers (glue: padding, im2col, weight permutation, pallas_call setup)
# ---------------------------------------------------------------------------
def im2col_hw_major(x, k, stride, pad):
    """x: [N, C, H, W] -> patches [Ho*Wo*N, C*k*k], rows ordered (h, w, n)."""
    x = jnp.pad(x, ((0, 0), (0, 0), (pad, pad), (pad, pad)))
    n, c, hp, wp = x.shape
    ho = (hp - k) // stride + 1
    wo = (wp - k) // stride + 1
    cols = []
    for i in range(k):
        for j in range(k):
            cols.append(x[:, :, i:i + stride * ho:stride, j:j + stride * wo:stride])
    p = jnp.stack(cols, axis=0).reshape(k, k, n, c, ho, wo)
    p = jnp.transpose(p, (4, 5, 2, 3, 0, 1))          # [Ho, Wo, N, C, kh, kw]
    return p.reshape(ho * wo * n, c * k * k), ho, wo


def fused_forward_pallas(patches, w_flat, bias2d, wh_perm, npad, hw_per_step):
    m, kp = patches.shape
    cout = w_flat.shape[1]
    f, jp = wh_perm.shape
    hw_total = f // cout
    g = hw_total // hw_per_step
    return pl.pallas_call(
        fused_cnn_kernel,
        out_shape=jax.ShapeDtypeStruct((npad, jp), jnp.float32),
        grid=(g,),
        in_specs=[
            # Streamed per step (pipelined HBM->VMEM DMA):
            pl.BlockSpec((hw_per_step * npad, kp), lambda i: (i, 0)),
            # Resident across all steps (constant block index -> fetched once):
            pl.BlockSpec((kp, cout), lambda i: (0, 0)),
            pl.BlockSpec((1, cout), lambda i: (0, 0)),
            # Head weight = largest input, streamed in K-chunks:
            pl.BlockSpec((hw_per_step * cout, jp), lambda i: (i, 0)),
        ],
        out_specs=pl.BlockSpec((npad, jp), lambda i: (0, 0)),
        compiler_params=pltpu.CompilerParams(
            dimension_semantics=("arbitrary",)),   # reduction axis: resident accumulator
    )(patches, w_flat, bias2d, wh_perm)


def cnn_forward(x, conv_w, conv_b, head_w, k, stride, pad):
    """Conv2d(stride=2)+ReLU -> flatten (PyTorch NCHW order) -> Linear head (no bias)."""
    n = x.shape[0]
    cout = conv_w.shape[0]

    # Pad batch to one bf16 sublane tile (16 rows): every per-hw activation slab
    # and the logits block are sublane-dense; padded rows are sliced off below.
    npad = ((n + 15) // 16) * 16
    xp = jnp.pad(x, ((0, npad - n), (0, 0), (0, 0), (0, 0)))

    patches, ho, wo = im2col_hw_major(xp, k, stride, pad)
    kk = patches.shape[1]
    kp = ((kk + 7) // 8) * 8                                  # pad K: 27 -> 32

    patches = jnp.pad(patches, ((0, 0), (0, kp - kk))).astype(jnp.bfloat16)
    w_flat = jnp.pad(conv_w.reshape(cout, -1).T,
                     ((0, kp - kk), (0, 0))).astype(jnp.bfloat16)   # [Kp, Cout]
    bias2d = conv_b.reshape(1, cout).astype(jnp.float32)

    # Head weight: permute once from PyTorch NCHW-flatten order (c*HW + hw) to the
    # kernel's hw-major order (hw*Cout + c), and zero-pad the class dim to a full
    # 128-lane tile so every transfer / store on the head path is dense.
    n_cls = head_w.shape[0]
    hw_total = ho * wo
    jp = ((n_cls + 127) // 128) * 128
    wh = head_w.reshape(n_cls, cout, ho, wo)                   # [J, Cout, Ho, Wo]
    wh_perm = wh.transpose(2, 3, 1, 0).reshape(hw_total * cout, n_cls)
    wh_perm = jnp.pad(wh_perm, ((0, 0), (0, jp - n_cls))).astype(jnp.bfloat16)

    # Stream the head weight (largest input) in K-chunks of hw_per_step spatial
    # positions so its DMA overlaps compute across the grid.
    hw_per_step = min(8, hw_total)
    while hw_total % hw_per_step:
        hw_per_step -= 1

    logits = fused_forward_pallas(patches, w_flat, bias2d, wh_perm, npad, hw_per_step)
    return logits[:n, :n_cls]


# ---------------------------------------------------------------------------
if __name__ == "__main__":
    key = jax.random.PRNGKey(0)
    N, Cin, H, W = 2, 3, 16, 16
    kernel_size, stride = 3, 2
    n_classes = 10
    Cout = 128
    pad = (kernel_size - 1) // 2

    kx, kw, kb, kh = jax.random.split(key, 4)
    x = jax.random.normal(kx, (N, Cin, H, W), jnp.float32)

    # deterministic synthetic parameters (shapes implied by the forward)
    conv_w = jax.random.normal(kw, (Cout, Cin, kernel_size, kernel_size),
                               jnp.float32) / math.sqrt(Cin * kernel_size * kernel_size)
    conv_b = 0.01 * jax.random.normal(kb, (Cout,), jnp.float32)

    Ho = (H + 2 * pad - kernel_size) // stride + 1
    Wo = (W + 2 * pad - kernel_size) // stride + 1
    F = Cout * Ho * Wo
    head_w = jax.random.normal(kh, (n_classes, F), jnp.float32) / math.sqrt(F ** 1.5)

    fwd = jax.jit(cnn_forward, static_argnums=(4, 5, 6))
    out = fwd(x, conv_w, conv_b, head_w, kernel_size, stride, pad)
    out = jax.block_until_ready(out)
    assert out.shape == (N, n_classes)

    # plain-JAX reference with matching bf16-input / f32-accumulation numerics
    xb = x.astype(jnp.bfloat16)
    cwb = conv_w.astype(jnp.bfloat16)
    ref = jax.lax.conv_general_dilated(
        xb, cwb, (stride, stride), [(pad, pad), (pad, pad)],
        dimension_numbers=("NCHW", "OIHW", "NCHW"),
        preferred_element_type=jnp.float32)
    ref = jnp.maximum(ref + conv_b[None, :, None, None], 0.0)
    feat = ref.reshape(N, -1).astype(jnp.bfloat16)
    ref_logits = jnp.dot(feat, head_w.T.astype(jnp.bfloat16),
                         preferred_element_type=jnp.float32)
    assert jnp.allclose(out, ref_logits, atol=5e-3, rtol=5e-3)

    print("KERNEL_OK")
</pallas_src>

<mosaic_0001>
module attributes {stable_mosaic.version = 11 : i64} {
  func.func @fused_cnn_kernel(%arg0: i32, %arg1: memref<128x32xbf16, #tpu.memory_space<vmem>>, %arg2: memref<32x128xbf16, #tpu.memory_space<vmem>>, %arg3: memref<1x128xf32, #tpu.memory_space<vmem>>, %arg4: memref<1024x128xbf16, #tpu.memory_space<vmem>>, %arg5: memref<16x128xf32, #tpu.memory_space<vmem>>) attributes {dimension_semantics = [#tpu.dimension_semantics<arbitrary>], iteration_bounds = array<i64: 8>, scalar_prefetch = 0 : i64, scratch_operands = 0 : i64, tpu.core_type = #tpu.core_type<tc>, window_params = [{transform_indices = @transform_0, window_bounds = array<i64: 128, 32>}, {pipeline_mode = #tpu.pipeline_mode<synchronous>, transform_indices = @transform_1, window_bounds = array<i64: 32, 128>}, {pipeline_mode = #tpu.pipeline_mode<synchronous>, transform_indices = @transform_2, window_bounds = array<i64: 1, 128>}, {transform_indices = @transform_3, window_bounds = array<i64: 1024, 128>}, {pipeline_mode = #tpu.pipeline_mode<synchronous>, transform_indices = @transform_4, window_bounds = array<i64: 16, 128>}]} {
    %c0_i32 = arith.constant 0 : i32
    %0 = arith.cmpi eq, %arg0, %c0_i32 : i32
    %1 = arith.extui %0 : i1 to i32
    %c0_i32_0 = arith.constant 0 : i32
    %2 = arith.cmpi ne, %1, %c0_i32_0 : i32
    scf.if %2 {
      %cst_29 = arith.constant 0.000000e+00 : f32
      %48 = vector.broadcast %cst_29 : f32 to vector<16x128xf32>
      %c0_30 = arith.constant 0 : index
      %c0_31 = arith.constant 0 : index
      %49 = vector.load %arg5[%c0_30, %c0_31] : memref<16x128xf32, #tpu.memory_space<vmem>>, vector<16x128xf32>
      tpu.vector_store %arg5[%c0_30, %c0_31], %48 {strides = array<i32>} : memref<16x128xf32, #tpu.memory_space<vmem>>, vector<16x128xf32>,
    } else {
    }
    %c0 = arith.constant 0 : index
    %c0_1 = arith.constant 0 : index
    %3 = vector.load %arg1[%c0, %c0_1] : memref<128x32xbf16, #tpu.memory_space<vmem>>, vector<128x32xbf16>
    %c0_2 = arith.constant 0 : index
    %c0_3 = arith.constant 0 : index
    %4 = vector.load %arg2[%c0_2, %c0_3] : memref<32x128xbf16, #tpu.memory_space<vmem>>, vector<32x128xbf16>
    %cst = arith.constant dense<0.000000e+00> : vector<128x128xf32>
    %5 = tpu.matmul %3, %4, %cst {dimension_numbers = #tpu.dot_dimension_numbers<[1], [0], [0], [1], [0, 0, 1, 1], [], []>} : vector<128x32xbf16>, vector<32x128xbf16>, vector<128x128xf32> -> vector<128x128xf32>
    %c0_4 = arith.constant 0 : index
    %c0_5 = arith.constant 0 : index
    %6 = vector.load %arg3[%c0_4, %c0_5] : memref<1x128xf32, #tpu.memory_space<vmem>>, vector<1x128xf32>
    %7 = vector.broadcast %6 : vector<1x128xf32> to vector<128x128xf32>
    %8 = arith.addf %5, %7 : vector<128x128xf32>
    %cst_6 = arith.constant 0.000000e+00 : f32
    %9 = vector.broadcast %cst_6 : f32 to vector<128x128xf32>
    %10 = arith.maximumf %8, %9 : vector<128x128xf32>
    %11 = arith.truncf %10 : vector<128x128xf32> to vector<128x128xbf16>
    %cst_7 = arith.constant 0.000000e+00 : f32
    %12 = vector.broadcast %cst_7 : f32 to vector<16x128xf32>
    %13 = vector.extract_strided_slice %11 {offsets = [0, 0], sizes = [16, 128], strides = [1, 1]} : vector<128x128xbf16> to vector<16x128xbf16>
    %c0_8 = arith.constant 0 : index
    %c0_9 = arith.constant 0 : index
    %14 = vector.load %arg4[%c0_8, %c0_9] : memref<1024x128xbf16, #tpu.memory_space<vmem>>, vector<128x128xbf16>
    %cst_10 = arith.constant dense<0.000000e+00> : vector<16x128xf32>
    %15 = tpu.matmul %13, %14, %cst_10 {dimension_numbers = #tpu.dot_dimension_numbers<[1], [0], [0], [1], [0, 0, 1, 1], [], []>} : vector<16x128xbf16>, vector<128x128xbf16>, vector<16x128xf32> -> vector<16x128xf32>
    %16 = arith.addf %12, %15 : vector<16x128xf32>
    %17 = vector.extract_strided_slice %11 {offsets = [16, 0], sizes = [16, 128], strides = [1, 1]} : vector<128x128xbf16> to vector<16x128xbf16>
    %c128 = arith.constant 128 : index
    %c0_11 = arith.constant 0 : index
    %18 = vector.load %arg4[%c128, %c0_11] : memref<1024x128xbf16, #tpu.memory_space<vmem>>, vector<128x128xbf16>
    %cst_12 = arith.constant dense<0.000000e+00> : vector<16x128xf32>
    %19 = tpu.matmul %17, %18, %cst_12 {dimension_numbers = #tpu.dot_dimension_numbers<[1], [0], [0], [1], [0, 0, 1, 1], [], []>} : vector<16x128xbf16>, vector<128x128xbf16>, vector<16x128xf32> -> vector<16x128xf32>
    %20 = arith.addf %16, %19 : vector<16x128xf32>
    %21 = vector.extract_strided_slice %11 {offsets = [32, 0], sizes = [16, 128], strides = [1, 1]} : vector<128x128xbf16> to vector<16x128xbf16>
    %c256 = arith.constant 256 : index
    %c0_13 = arith.constant 0 : index
    %22 = vector.load %arg4[%c256, %c0_13] : memref<1024x128xbf16, #tpu.memory_space<vmem>>, vector<128x128xbf16>
    %cst_14 = arith.constant dense<0.000000e+00> : vector<16x128xf32>
    %23 = tpu.matmul %21, %22, %cst_14 {dimension_numbers = #tpu.dot_dimension_numbers<[1], [0], [0], [1], [0, 0, 1, 1], [], []>} : vector<16x128xbf16>, vector<128x128xbf16>, vector<16x128xf32> -> vector<16x128xf32>
    %24 = arith.addf %20, %23 : vector<16x128xf32>
    %25 = vector.extract_strided_slice %11 {offsets = [48, 0], sizes = [16, 128], strides = [1, 1]} : vector<128x128xbf16> to vector<16x128xbf16>
    %c384 = arith.constant 384 : index
    %c0_15 = arith.constant 0 : index
    %26 = vector.load %arg4[%c384, %c0_15] : memref<1024x128xbf16, #tpu.memory_space<vmem>>, vector<128x128xbf16>
    %cst_16 = arith.constant dense<0.000000e+00> : vector<16x128xf32>
    %27 = tpu.matmul %25, %26, %cst_16 {dimension_numbers = #tpu.dot_dimension_numbers<[1], [0], [0], [1], [0, 0, 1, 1], [], []>} : vector<16x128xbf16>, vector<128x128xbf16>, vector<16x128xf32> -> vector<16x128xf32>
    %28 = arith.addf %24, %27 : vector<16x128xf32>
    %29 = vector.extract_strided_slice %11 {offsets = [64, 0], sizes = [16, 128], strides = [1, 1]} : vector<128x128xbf16> to vector<16x128xbf16>
    %c512 = arith.constant 512 : index
    %c0_17 = arith.constant 0 : index
    %30 = vector.load %arg4[%c512, %c0_17] : memref<1024x128xbf16, #tpu.memory_space<vmem>>, vector<128x128xbf16>
    %cst_18 = arith.constant dense<0.000000e+00> : vector<16x128xf32>
    %31 = tpu.matmul %29, %30, %cst_18 {dimension_numbers = #tpu.dot_dimension_numbers<[1], [0], [0], [1], [0, 0, 1, 1], [], []>} : vector<16x128xbf16>, vector<128x128xbf16>, vector<16x128xf32> -> vector<16x128xf32>
    %32 = arith.addf %28, %31 : vector<16x128xf32>
    %33 = vector.extract_strided_slice %11 {offsets = [80, 0], sizes = [16, 128], strides = [1, 1]} : vector<128x128xbf16> to vector<16x128xbf16>
    %c640 = arith.constant 640 : index
    %c0_19 = arith.constant 0 : index
    %34 = vector.load %arg4[%c640, %c0_19] : memref<1024x128xbf16, #tpu.memory_space<vmem>>, vector<128x128xbf16>
    %cst_20 = arith.constant dense<0.000000e+00> : vector<16x128xf32>
    %35 = tpu.matmul %33, %34, %cst_20 {dimension_numbers = #tpu.dot_dimension_numbers<[1], [0], [0], [1], [0, 0, 1, 1], [], []>} : vector<16x128xbf16>, vector<128x128xbf16>, vector<16x128xf32> -> vector<16x128xf32>
    %36 = arith.addf %32, %35 : vector<16x128xf32>
    %37 = vector.extract_strided_slice %11 {offsets = [96, 0], sizes = [16, 128], strides = [1, 1]} : vector<128x128xbf16> to vector<16x128xbf16>
    %c768 = arith.constant 768 : index
    %c0_21 = arith.constant 0 : index
    %38 = vector.load %arg4[%c768, %c0_21] : memref<1024x128xbf16, #tpu.memory_space<vmem>>, vector<128x128xbf16>
    %cst_22 = arith.constant dense<0.000000e+00> : vector<16x128xf32>
    %39 = tpu.matmul %37, %38, %cst_22 {dimension_numbers = #tpu.dot_dimension_numbers<[1], [0], [0], [1], [0, 0, 1, 1], [], []>} : vector<16x128xbf16>, vector<128x128xbf16>, vector<16x128xf32> -> vector<16x128xf32>
    %40 = arith.addf %36, %39 : vector<16x128xf32>
    %41 = vector.extract_strided_slice %11 {offsets = [112, 0], sizes = [16, 128], strides = [1, 1]} : vector<128x128xbf16> to vector<16x128xbf16>
    %c896 = arith.constant 896 : index
    %c0_23 = arith.constant 0 : index
    %42 = vector.load %arg4[%c896, %c0_23] : memref<1024x128xbf16, #tpu.memory_space<vmem>>, vector<128x128xbf16>
    %cst_24 = arith.constant dense<0.000000e+00> : vector<16x128xf32>
    %43 = tpu.matmul %41, %42, %cst_24 {dimension_numbers = #tpu.dot_dimension_numbers<[1], [0], [0], [1], [0, 0, 1, 1], [], []>} : vector<16x128xbf16>, vector<128x128xbf16>, vector<16x128xf32> -> vector<16x128xf32>
    %44 = arith.addf %40, %43 : vector<16x128xf32>
    %c0_25 = arith.constant 0 : index
    %c0_26 = arith.constant 0 : index
    %45 = vector.load %arg5[%c0_25, %c0_26] : memref<16x128xf32, #tpu.memory_space<vmem>>, vector<16x128xf32>
    %46 = arith.addf %45, %44 : vector<16x128xf32>
    %c0_27 = arith.constant 0 : index
    %c0_28 = arith.constant 0 : index
    %47 = vector.load %arg5[%c0_27, %c0_28] : memref<16x128xf32, #tpu.memory_space<vmem>>, vector<16x128xf32>
    tpu.vector_store %arg5[%c0_27, %c0_28], %46 {strides = array<i32>} : memref<16x128xf32, #tpu.memory_space<vmem>>, vector<16x128xf32>,
    return
  }
  func.func @transform_0(%arg0: i32) -> (i32, i32) {
    %c0_i32 = arith.constant 0 : i32
    %c0_i32_0 = arith.constant 0 : i32
    return %arg0, %c0_i32 : i32, i32
  }
  func.func @transform_1(%arg0: i32) -> (i32, i32) {
    %c0_i32 = arith.constant 0 : i32
    %c0_i32_0 = arith.constant 0 : i32
    %c0_i32_1 = arith.constant 0 : i32
    return %c0_i32, %c0_i32_0 : i32, i32
  }
  func.func @transform_2(%arg0: i32) -> (i32, i32) {
    %c0_i32 = arith.constant 0 : i32
    %c0_i32_0 = arith.constant 0 : i32
    %c0_i32_1 = arith.constant 0 : i32
    return %c0_i32, %c0_i32_0 : i32, i32
  }
  func.func @transform_3(%arg0: i32) -> (i32, i32) {
    %c0_i32 = arith.constant 0 : i32
    %c0_i32_0 = arith.constant 0 : i32
    return %arg0, %c0_i32 : i32, i32
  }
  func.func @transform_4(%arg0: i32) -> (i32, i32) {
    %c0_i32 = arith.constant 0 : i32
    %c0_i32_0 = arith.constant 0 : i32
    %c0_i32_1 = arith.constant 0 : i32
    return %c0_i32, %c0_i32_0 : i32, i32
  }
}

</mosaic_0001>

<bundles_post_ra>
// kernel: cnn_forward.1
= control target key start
LH: loop header
LB: loop body
LE: loop exit
PB: predicated region body
PF: predicated region fallthrough
CT: control target
= control target key end

     0   :  { %s1814_s15 = smov 0   ;;  %s2058_s0 = inlined_call_operand.vmem [shape: bf16[1024,32], index: 0, kind: input, shape index: {}]   ;;  %s2059_s1 = inlined_call_operand.vmem [shape: bf16[32,128], index: 1, kind: input, shape index: {}]   ;;  %s2060_s2 = inlined_call_operand.vmem [shape: f32[1,128], index: 2, kind: input, shape index: {}]   ;;  %s2061_s3 = inlined_call_operand.vmem [shape: bf16[8192,128], index: 3, kind: input, shape index: {}]   ;;  %s2062_s4 = inlined_call_operand.vmem [shape: f32[16,128], index: 4, kind: output, shape index: {}]  }
   0x1 LB: > { %s1337_s16 = sadd.s32 4294967295, %s1784_s15   ;;  %p1340_p0 = scmp.ge.s32.totalorder %s1784_s15, 1  ;;  %s1784_s15 = sphi %s1814_s15, %s14_s15  }
   0x2   : > { %p169_p1 = scmp.lt.s32.totalorder %s1784_s15, 9 }
   0x4   : > { %p170_p2 = pnand %p1340_p0, %p169_p1 }
   0x5   : > { %s1341_s17 = sshll.u32 (!%p170_p2), %s1337_s16, 4  ;;  %s1343_s18 = sshll.u32 (!%p170_p2), %s1337_s16, 7 }
   0x6   : > { %173 = sbr.rel (%p170_p2) target bundleno = 569 (0x239), region = 36  ;;  %p196_p3 = scmp.lt.s32.totalorder (!%p170_p2), %s1341_s17, 127 }
   0x7   : > { %p202_p4 = scmp.lt.s32.totalorder (!%p170_p2), %s1343_s18, 1023  ;;  %p1345_p5 = scmp.ne.s32.totalorder (!%p170_p2), %s1337_s16, 0 }
   0xd   : > { %s2064_s17 = smov (!%p196_p3, %s1341_s17), 127  ;;  %s2066_s18 = smov (!%p202_p4, %s1343_s18), 1023 }
   0xe   : > { %s1342_s19 = sshll.u32 %s2064_s17, 2  ;;  %s1344_s23 = sshll.u32 %s2066_s18, 2  ;;  %v1786_v0 = vmov (!%p1345_p5), 0.0  }
   0xf   : > { %s1825_s22 = scalar_lea.vmem %s2058_s0, %s1342_s19  ;;  %s1830_s26 = scalar_lea.vmem %s2061_s3, %s1344_s23  ;;  %212 = vst [vmem:[%s2062_s4] sm:$0xff] (!%p1345_p5), %v1786_v0  ;;  %213 = vst [vmem:[%s2062_s4 + $0x8] sm:$0xff] (!%p1345_p5), %v1786_v0 }
  0x10   : > { %211 = sbr.rel (%p1345_p5) target bundleno = 23 (0x17), region = 40 }
  0x17 PF: > { %v1704_v1 = vld [vmem:[%s2059_s1] sm:$0xff]   ;;  %vm293_vm0 = vcmask 261120   ;;  %v1705_v2 = vld [vmem:[%s2059_s1 + $0x8] sm:$0xff]   ;;  %v1787_v4 = vmov 0.0   ;;  %v1708_v6 = vld [vmem:[%s1825_s22 + $0x10] sm:$0xff]   ;;  %vm1788_vm1 = vmmov 0  }
  0x18   : > { %1513 = vmatprep.subr.bf16.mxu0 %v1704_v1  ;;  %v1706_v3 = vld [vmem:[%s1825_s22] sm:$0xff]   ;;  %1533 = vmatprep.subr.bf16.mxu1 %v1787_v4  ;;  %v1707_v5 = vld [vmem:[%s1825_s22 + $0x8] sm:$0xff]   ;;  %v1709_v11 = vld [vmem:[%s1825_s22 + $0x18] sm:$0xff]  }
  0x19   : > { %1514 = vmatpush3.bf16.msra.mxu0 %v1704_v1  ;;  %1517 = vmatprep.mubr.msk.bf16.mxu0 %vm293_vm0, %v1706_v3  ;;  %v1714_v7 = vld [vmem:[%s1830_s26 + $0x40] sm:$0xff]   ;;  %v1716_v9 = vld [vmem:[%s1830_s26 + $0x48] sm:$0xff]   ;;  %v1718_v13 = vld [vmem:[%s1830_s26 + $0x50] sm:$0xff]  }
  0x1a   : > { %1515 = vmatprep.subr.bf16.mxu0 %v1705_v2  ;;  %v1715_v8 = vld [vmem:[%s1830_s26] sm:$0xff]   ;;  %1534 = vmatpush3.bf16.msra.mxu1 %v1714_v7  ;;  %v1717_v10 = vld [vmem:[%s1830_s26 + $0x8] sm:$0xff]   ;;  %v1719_v14 = vld [vmem:[%s1830_s26 + $0x10] sm:$0xff]  }
  0x1b   : > { %1535 = vmatprep.subr.bf16.mxu1 %v1787_v4  ;;  %v1710_v12 = vld [vmem:[%s1825_s22 + $0x20] sm:$0xff]   ;;  %v1711_v15 = vld [vmem:[%s1825_s22 + $0x28] sm:$0xff]   ;;  %v1720_v16 = vld [vmem:[%s1830_s26 + $0x58] sm:$0xff]   ;;  %1549 = vmatprep.mubr.msk.bf16.mxu1 %vm1788_vm1, %v1787_v4 }
  0x1c   : > { %v1712_v17 = vld [vmem:[%s1825_s22 + $0x30] sm:$0xff]   ;;  %v1721_v18 = vld [vmem:[%s1830_s26 + $0x18] sm:$0xff]   ;;  %v1722_v19 = vld [vmem:[%s1830_s26 + $0x60] sm:$0xff]  }
  0x1d   : > { %1516 = vmatpush3.bf16.msra.mxu0 %v1705_v2  ;;  %v1723_v20 = vld [vmem:[%s1830_s26 + $0x20] sm:$0xff]   ;;  %v1724_v21 = vld [vmem:[%s1830_s26 + $0x68] sm:$0xff]   ;;  %v1713_v23 = vld [vmem:[%s1825_s22 + $0x38] sm:$0xff]  }
  0x1e   : > { %1553 = vmatprep.subr.bf16.mxu0 %v1787_v4  ;;  %1536 = vmatpush3.bf16.msra.mxu1 %v1716_v9  ;;  %v1725_v22 = vld [vmem:[%s1830_s26 + $0x28] sm:$0xff]   ;;  %v1726_v24 = vld [vmem:[%s1830_s26 + $0x70] sm:$0xff]   ;;  %v1728_v26 = vld [vmem:[%s1830_s26 + $0x78] sm:$0xff]  }
  0x1f   : > { %1537 = vmatprep.subr.bf16.mxu1 %v1787_v4  ;;  %v1727_v25 = vld [vmem:[%s1830_s26 + $0x30] sm:$0xff]   ;;  %v1729_v27 = vld [vmem:[%s1830_s26 + $0x38] sm:$0xff]   ;;  %v1901_v28 = vld [vmem:[%s2060_s2] ss:$0 sm:$0xff] }
  0x20   : > { %1518 = vmatmul.mubr.msk.bf16.vlgmr.msra.gmra.mrb[0].mxu0 %vm293_vm0, %v1707_v5  ;;  %v1730_v41 = vld [vmem:[%s1830_s26 + $0x80] sm:$0xff]   ;;  %v1732_v48 = vld [vmem:[%s1830_s26 + $0x88] sm:$0xff]   ;;  %v1734_v58 = vld [vmem:[%s1830_s26 + $0x90] sm:$0xff]  }
  0x21   : > { %1521 = vmatprep.mubr.msk.bf16.mxu0 %vm293_vm0, %v1708_v6  ;;  %1554 = vmatpush3.bf16.msra.mxu0 %v1715_v8  ;;  %v1731_v43 = vld [vmem:[%s1830_s26 + $0xc0] sm:$0xff]   ;;  %v1733_v51 = vld [vmem:[%s1830_s26 + $0xc8] sm:$0xff]   ;;  %v1735_v60 = vld [vmem:[%s1830_s26 + $0xd0] sm:$0xff]  }
  0x22   : > { %1555 = vmatprep.subr.bf16.mxu0 %v1787_v4  ;;  %1538 = vmatpush3.bf16.msra.mxu1 %v1718_v13  ;;  %v1736_v2 = vld [vmem:[%s1830_s26 + $0x98] sm:$0xff]   ;;  %v1738_v13 = vld [vmem:[%s1830_s26 + $0xa0] sm:$0xff]  }
  0x23   : > { %1539 = vmatprep.subr.bf16.mxu1 %v1787_v4  ;;  %v1737_v6 = vld [vmem:[%s1830_s26 + $0xd8] sm:$0xff]  }
  0x25   : > { %1556 = vmatpush3.bf16.msra.mxu0 %v1717_v10 }
  0x26   : > { %1557 = vmatprep.subr.bf16.mxu0 %v1787_v4  ;;  %1540 = vmatpush3.bf16.msra.mxu1 %v1720_v16 }
  0x27   : > { %1541 = vmatprep.subr.bf16.mxu1 %v1787_v4 }
  0x28   : > { %1522 = vmatmul.mubr.msk.bf16.gmra.mrb[4].mxu0 %vm293_vm0, %v1709_v11 }
  0x29   : > { %1525 = vmatprep.mubr.msk.bf16.mxu0 %vm293_vm0, %v1710_v12  ;;  %1558 = vmatpush3.bf16.msra.mxu0 %v1719_v14 }
  0x2a   : > { %1559 = vmatprep.subr.bf16.mxu0 %v1787_v4  ;;  %1542 = vmatpush3.bf16.msra.mxu1 %v1722_v19 }
  0x2b   : > { %1543 = vmatprep.subr.bf16.mxu1 %v1787_v4 }
  0x2d   : > { %1560 = vmatpush3.bf16.msra.mxu0 %v1721_v18 }
  0x2e   : > { %1561 = vmatprep.subr.bf16.mxu0 %v1787_v4  ;;  %1544 = vmatpush3.bf16.msra.mxu1 %v1724_v21  ;;  %v1740_v21 = vld [vmem:[%s1830_s26 + $0xa8] sm:$0xff]  }
  0x2f   : > { %1545 = vmatprep.subr.bf16.mxu1 %v1787_v4 }
  0x30   : > { %1526 = vmatmul.mubr.msk.bf16.gmra.mrb[8].mxu0 %vm293_vm0, %v1711_v15  ;;  %v1739_v15 = vld [vmem:[%s1830_s26 + $0xe0] sm:$0xff]  }
  0x31   : > { %1529 = vmatprep.mubr.msk.bf16.mxu0 %vm293_vm0, %v1712_v17  ;;  %1562 = vmatpush3.bf16.msra.mxu0 %v1723_v20 }
  0x32   : > { %1563 = vmatprep.subr.bf16.mxu0 %v1787_v4  ;;  %1546 = vmatpush3.bf16.msra.mxu1 %v1726_v24  ;;  %v1741_v24 = vld [vmem:[%s1830_s26 + $0xe8] sm:$0xff]  }
  0x33   : > { %1547 = vmatprep.subr.bf16.mxu1 %v1787_v4 }
  0x35   : > { %1564 = vmatpush3.bf16.msra.mxu0 %v1725_v22 }
  0x36   : > { %1565 = vmatprep.subr.bf16.mxu0 %v1787_v4  ;;  %1548 = vmatpush3.bf16.msra.mxu1 %v1728_v26 }
  0x37   : > { %1573 = vmatprep.subr.bf16.mxu1 %v1787_v4 }
  0x38   : > { %1530 = vmatmul.mubr.msk.bf16.gmra.mrb[12].mxu0 %vm293_vm0, %v1713_v23 }
  0x39   : > { %1566 = vmatpush3.bf16.msra.mxu0 %v1727_v25  ;;  %1569 = vmatprep.mubr.msk.bf16.mxu0 %vm1788_vm1, %v1787_v4 }
  0x3a   : > { %1567 = vmatprep.subr.bf16.mxu0 %v1787_v4 }
  0x3d   : > { %1568 = vmatpush3.bf16.msra.mxu0 %v1729_v27 }
  0x3e   : > { %1593 = vmatprep.subr.bf16.mxu0 %v1787_v4 }
  0xf3   : > { %v1519_v29 = vpop.f32.mrb[0].mxu0 }
  0xf4   : > { %v361_v30 = vadd.f32 %v1519_v29, %v1901_v28  ;;  %v352_v31 = vpop.f32.mrb[1].mxu0 }
  0xf5   : > { %v353_v32 = vadd.f32 %v1901_v28, %v352_v31  ;;  %v1520_v33 = vpop.f32.mrb[2].mxu0 }
  0xf6   : > { %v364_v34 = vadd.f32 %v1520_v33, %v1901_v28  ;;  %v355_v35 = vpop.f32.mrb[3].mxu0  ;;  %v417_v37 = vmax.f32 %v361_v30, 0.0 }
  0xf7   : > { %v356_v36 = vadd.f32 %v1901_v28, %v355_v35  ;;  %v415_v39 = vmax.f32 %v353_v32, 0.0  ;;  %v1742_v32 = vld [vmem:[%s1830_s26 + $0xb0] sm:$0xff]  }
  0xf8   : > { %v418_v38 = vmax.f32 %v364_v34, 0.0  ;;  %v1743_v34 = vld [vmem:[%s1830_s26 + $0xf0] sm:$0xff]  }
  0xf9   : > { %v416_v40 = vmax.f32 %v356_v36, 0.0 }
  0xfa   : > { %v432_v42 = vpack.c.bf16 %v418_v38, %v417_v37  ;;  %v1744_v37 = vld [vmem:[%s1830_s26 + $0xb8] sm:$0xff]   ;;  %v1746_v38 = vld [vmem:[%s1830_s26 + $0x100] sm:$0xff]  }
  0xfb   : > { %v431_v44 = vpack.c.bf16 %v416_v40, %v415_v39  ;;  %v1523_v45 = vpop.f32.mrb[4].mxu0  ;;  %v1747_v39 = vld [vmem:[%s1830_s26 + $0x140] sm:$0xff]   ;;  %v1748_v40 = vld [vmem:[%s1830_s26 + $0x108] sm:$0xff]  }
  0xfc   : > { %1550 = vmatmul.mubr.bf16.vlgmr.msra.gmra.mrb[0].mxu1 %v432_v42  ;;  %v377_v46 = vadd.f32 %v1523_v45, %v1901_v28  ;;  %v368_v47 = vpop.f32.mrb[5].mxu0  ;;  %v1750_v42 = vld [vmem:[%s1830_s26 + $0x110] sm:$0xff]   ;;  %v1753_v45 = vld [vmem:[%s1830_s26 + $0x158] sm:$0xff]  }
  0xfd   : > { %1574 = vmatpush3.bf16.msra.mxu1 %v1730_v41  ;;  %1570 = vmatmul.mubr.bf16.vlgmr.msra.gmra.mrb[16].mxu0 %v431_v44  ;;  %v369_v49 = vadd.f32 %v1901_v28, %v368_v47  ;;  %v1524_v50 = vpop.f32.mrb[6].mxu0  ;;  %v1749_v41 = vld [vmem:[%s1830_s26 + $0x148] sm:$0xff]   ;;  %v1752_v44 = vld [vmem:[%s1830_s26 + $0x118] sm:$0xff]   ;;  %v1755_v47 = vld [vmem:[%s1830_s26 + $0x160] sm:$0xff]  }
  0xfe   : > { %1594 = vmatpush3.bf16.msra.mxu0 %v1731_v43  ;;  %1575 = vmatprep.subr.bf16.mxu1 %v1787_v4  ;;  %v421_v52 = vmax.f32 %v377_v46, 0.0  ;;  %v380_v53 = vadd.f32 %v1524_v50, %v1901_v28  ;;  %v371_v54 = vpop.f32.mrb[7].mxu0  ;;  %v1751_v43 = vld [vmem:[%s1830_s26 + $0x150] sm:$0xff]   ;;  %v1754_v46 = vld [vmem:[%s1830_s26 + $0x120] sm:$0xff]  }
  0xff   : > { %1595 = vmatprep.subr.bf16.mxu0 %v1787_v4  ;;  %v419_v55 = vmax.f32 %v369_v49, 0.0  ;;  %v372_v56 = vadd.f32 %v1901_v28, %v371_v54  ;;  %1589 = vmatprep.mubr.msk.bf16.mxu1 %vm1788_vm1, %v1787_v4  ;;  %v1757_v49 = vld [vmem:[%s1830_s26 + $0x168] sm:$0xff]   ;;  %v1758_v50 = vld [vmem:[%s1830_s26 + $0x130] sm:$0xff]   ;;  %v1762_v54 = vld [vmem:[%s1830_s26 + $0x180] sm:$0xff]  }
 0x100   : > { %v422_v57 = vmax.f32 %v380_v53, 0.0  ;;  %1609 = vmatprep.mubr.msk.bf16.mxu0 %vm1788_vm1, %v1787_v4  ;;  %v1761_v53 = vld [vmem:[%s1830_s26 + $0x178] sm:$0xff]  }
 0x101   : > { %1576 = vmatpush3.bf16.msra.mxu1 %v1732_v48  ;;  %v420_v59 = vmax.f32 %v372_v56, 0.0  ;;  %v1756_v48 = vld [vmem:[%s1830_s26 + $0x128] sm:$0xff]  }
 0x102   : > { %1596 = vmatpush3.bf16.msra.mxu0 %v1733_v51  ;;  %1577 = vmatprep.subr.bf16.mxu1 %v1787_v4  ;;  %v1924_v61 = vpack.c.bf16 %v422_v57, %v421_v52  ;;  %v1759_v51 = vld [vmem:[%s1830_s26 + $0x170] sm:$0xff]   ;;  %v1760_v52 = vld [vmem:[%s1830_s26 + $0x138] sm:$0xff]   ;;  %v1764_v56 = vld [vmem:[%s1830_s26 + $0x188] sm:$0xff]  }
 0x103   : > { %1597 = vmatprep.subr.bf16.mxu0 %v1787_v4  ;;  %v1927_v62 = vpack.c.bf16 %v420_v59, %v419_v55  ;;  %v1527_v63 = vpop.f32.mrb[8].mxu0  ;;  %v1763_v55 = vld [vmem:[%s1830_s26 + $0x1c0] sm:$0xff]   ;;  %v1765_v57 = vld [vmem:[%s1830_s26 + $0x1c8] sm:$0xff]   ;;  %v1767_v59 = vld [vmem:[%s1830_s26 + $0x1d0] sm:$0xff]  }
 0x104   : > { %v393_v0 = vadd.f32 %v1527_v63, %v1901_v28  ;;  %v384_v1 = vpop.f32.mrb[9].mxu0  ;;  %v1771_v63 = vld [vmem:[%s1830_s26 + $0x1e0] sm:$0xff]  }
 0x105   : > { %1578 = vmatpush3.bf16.msra.mxu1 %v1734_v58  ;;  %v385_v3 = vadd.f32 %v1901_v28, %v384_v1  ;;  %v1528_v5 = vpop.f32.mrb[10].mxu0  ;;  %v1766_v58 = vld [vmem:[%s1830_s26 + $0x190] sm:$0xff]   ;;  %v1773_v1 = vld [vmem:[%s1830_s26 + $0x1e8] sm:$0xff]  }
 0x106   : > { %1598 = vmatpush3.bf16.msra.mxu0 %v1735_v60  ;;  %1579 = vmatprep.subr.bf16.mxu1 %v1787_v4  ;;  %v425_v7 = vmax.f32 %v393_v0, 0.0  ;;  %v396_v8 = vadd.f32 %v1528_v5, %v1901_v28  ;;  %v387_v9 = vpop.f32.mrb[11].mxu0  ;;  %v1768_v60 = vld [vmem:[%s1830_s26 + $0x198] sm:$0xff]   ;;  %v1772_v0 = vld [vmem:[%s1830_s26 + $0x1a8] sm:$0xff]  }
 0x107   : > { %1599 = vmatprep.subr.bf16.mxu0 %v1787_v4  ;;  %v423_v10 = vmax.f32 %v385_v3, 0.0  ;;  %v388_v11 = vadd.f32 %v1901_v28, %v387_v9  ;;  %v1775_v3 = vld [vmem:[%s1830_s26 + $0x1f0] sm:$0xff]   ;;  %v1776_v5 = vld [vmem:[%s1830_s26 + $0x1b8] sm:$0xff]  }
 0x108   : > { %v426_v12 = vmax.f32 %v396_v8, 0.0 }
 0x109   : > { %1580 = vmatpush3.bf16.msra.mxu1 %v1736_v2  ;;  %v424_v14 = vmax.f32 %v388_v11, 0.0  ;;  %v1774_v2 = vld [vmem:[%s1830_s26 + $0x1b0] sm:$0xff]  }
 0x10a   : > { %1600 = vmatpush3.bf16.msra.mxu0 %v1737_v6  ;;  %1581 = vmatprep.subr.bf16.mxu1 %v1787_v4  ;;  %v1940_v16 = vpack.c.bf16 %v426_v12, %v425_v7  ;;  %v1777_v6 = vld [vmem:[%s1830_s26 + $0x1f8] sm:$0xff]  }
 0x10b   : > { %1601 = vmatprep.subr.bf16.mxu0 %v1787_v4  ;;  %v1943_v17 = vpack.c.bf16 %v424_v14, %v423_v10  ;;  %v1531_v18 = vpop.f32.mrb[12].mxu0 }
 0x10c   : > { %v409_v19 = vadd.f32 %v1531_v18, %v1901_v28  ;;  %v400_v20 = vpop.f32.mrb[13].mxu0 }
 0x10d   : > { %1582 = vmatpush3.bf16.msra.mxu1 %v1738_v13  ;;  %v401_v22 = vadd.f32 %v1901_v28, %v400_v20  ;;  %v1532_v23 = vpop.f32.mrb[14].mxu0 }
 0x10e   : > { %1602 = vmatpush3.bf16.msra.mxu0 %v1739_v15  ;;  %1583 = vmatprep.subr.bf16.mxu1 %v1787_v4  ;;  %v429_v25 = vmax.f32 %v409_v19, 0.0  ;;  %v412_v26 = vadd.f32 %v1532_v23, %v1901_v28  ;;  %v403_v27 = vpop.f32.mrb[15].mxu0 }
 0x10f   : > { %1603 = vmatprep.subr.bf16.mxu0 %v1787_v4  ;;  %v427_v29 = vmax.f32 %v401_v22, 0.0  ;;  %v404_v30 = vadd.f32 %v1901_v28, %v403_v27  ;;  %v1745_v28 = vld [vmem:[%s1830_s26 + $0xf8] sm:$0xff]  }
 0x110   : > { %v430_v31 = vmax.f32 %v412_v26, 0.0 }
 0x111   : > { %1584 = vmatpush3.bf16.msra.mxu1 %v1740_v21  ;;  %v428_v33 = vmax.f32 %v404_v30, 0.0 }
 0x112   : > { %1604 = vmatpush3.bf16.msra.mxu0 %v1741_v24  ;;  %1585 = vmatprep.subr.bf16.mxu1 %v1787_v4  ;;  %v1956_v35 = vpack.c.bf16 %v430_v31, %v429_v25 }
 0x113   : > { %1605 = vmatprep.subr.bf16.mxu0 %v1787_v4  ;;  %v1959_v36 = vpack.c.bf16 %v428_v33, %v427_v29 }
 0x115   : > { %1586 = vmatpush3.bf16.msra.mxu1 %v1742_v32 }
 0x116   : > { %1606 = vmatpush3.bf16.msra.mxu0 %v1743_v34  ;;  %1587 = vmatprep.subr.bf16.mxu1 %v1787_v4 }
 0x117   : > { %1607 = vmatprep.subr.bf16.mxu0 %v1787_v4 }
 0x119   : > { %1588 = vmatpush3.bf16.msra.mxu1 %v1744_v37 }
 0x11a   : > { %1608 = vmatpush3.bf16.msra.mxu0 %v1745_v28  ;;  %1613 = vmatprep.subr.bf16.mxu1 %v1787_v4 }
 0x11b   : > { %1633 = vmatprep.subr.bf16.mxu0 %v1787_v4 }
 0x11c   : > { %1590 = vmatmul.mubr.bf16.vlgmr.msra.gmra.mrb[4].mxu1 %v1927_v62  ;;  %v1770_v62 = vld [vmem:[%s1830_s26 + $0x1a0] sm:$0xff]  }
 0x11d   : > { %1610 = vmatmul.mubr.bf16.vlgmr.msra.gmra.mrb[20].mxu0 %v1924_v61  ;;  %1614 = vmatpush3.bf16.msra.mxu1 %v1746_v38  ;;  %v1769_v61 = vld [vmem:[%s1830_s26 + $0x1d8] sm:$0xff]  }
 0x11e   : > { %1634 = vmatpush3.bf16.msra.mxu0 %v1747_v39  ;;  %1615 = vmatprep.subr.bf16.mxu1 %v1787_v4 }
 0x11f   : > { %1635 = vmatprep.subr.bf16.mxu0 %v1787_v4  ;;  %1629 = vmatprep.mubr.msk.bf16.mxu1 %vm1788_vm1, %v1787_v4 }
 0x120   : > { %1649 = vmatprep.mubr.msk.bf16.mxu0 %vm1788_vm1, %v1787_v4 }
 0x121   : > { %1616 = vmatpush3.bf16.msra.mxu1 %v1748_v40 }
 0x122   : > { %1636 = vmatpush3.bf16.msra.mxu0 %v1749_v41  ;;  %1617 = vmatprep.subr.bf16.mxu1 %v1787_v4 }
 0x123   : > { %1637 = vmatprep.subr.bf16.mxu0 %v1787_v4 }
 0x125   : > { %1618 = vmatpush3.bf16.msra.mxu1 %v1750_v42 }
 0x126   : > { %1638 = vmatpush3.bf16.msra.mxu0 %v1751_v43  ;;  %1619 = vmatprep.subr.bf16.mxu1 %v1787_v4 }
 0x127   : > { %1639 = vmatprep.subr.bf16.mxu0 %v1787_v4 }
 0x129   : > { %1620 = vmatpush3.bf16.msra.mxu1 %v1752_v44  ;;  %v1291_v44 = vld [vmem:[%s2062_s4] sm:$0xff] }
 0x12a   : > { %1640 = vmatpush3.bf16.msra.mxu0 %v1753_v45  ;;  %1621 = vmatprep.subr.bf16.mxu1 %v1787_v4 }
 0x12b   : > { %1641 = vmatprep.subr.bf16.mxu0 %v1787_v4 }
 0x12d   : > { %1622 = vmatpush3.bf16.msra.mxu1 %v1754_v46 }
 0x12e   : > { %1642 = vmatpush3.bf16.msra.mxu0 %v1755_v47  ;;  %1623 = vmatprep.subr.bf16.mxu1 %v1787_v4 }
 0x12f   : > { %1643 = vmatprep.subr.bf16.mxu0 %v1787_v4 }
 0x131   : > { %1624 = vmatpush3.bf16.msra.mxu1 %v1756_v48 }
 0x132   : > { %1644 = vmatpush3.bf16.msra.mxu0 %v1757_v49  ;;  %1625 = vmatprep.subr.bf16.mxu1 %v1787_v4 }
 0x133   : > { %1645 = vmatprep.subr.bf16.mxu0 %v1787_v4 }
 0x135   : > { %1626 = vmatpush3.bf16.msra.mxu1 %v1758_v50 }
 0x136   : > { %1646 = vmatpush3.bf16.msra.mxu0 %v1759_v51  ;;  %1627 = vmatprep.subr.bf16.mxu1 %v1787_v4  ;;  %v1292_v51 = vld [vmem:[%s2062_s4 + $0x8] sm:$0xff] }
 0x137   : > { %1647 = vmatprep.subr.bf16.mxu0 %v1787_v4 }
 0x139   : > { %1628 = vmatpush3.bf16.msra.mxu1 %v1760_v52 }
 0x13a   : > { %1648 = vmatpush3.bf16.msra.mxu0 %v1761_v53  ;;  %1653 = vmatprep.subr.bf16.mxu1 %v1787_v4 }
 0x13b   : > { %1673 = vmatprep.subr.bf16.mxu0 %v1787_v4 }
 0x13c   : > { %1630 = vmatmul.mubr.bf16.vlgmr.msra.gmra.mrb[8].mxu1 %v1943_v17 }
 0x13d   : > { %1650 = vmatmul.mubr.bf16.vlgmr.msra.gmra.mrb[24].mxu0 %v1940_v16  ;;  %1654 = vmatpush3.bf16.msra.mxu1 %v1762_v54 }
 0x13e   : > { %1674 = vmatpush3.bf16.msra.mxu0 %v1763_v55  ;;  %1655 = vmatprep.subr.bf16.mxu1 %v1787_v4 }
 0x13f   : > { %1675 = vmatprep.subr.bf16.mxu0 %v1787_v4  ;;  %1669 = vmatprep.mubr.msk.bf16.mxu1 %vm1788_vm1, %v1787_v4 }
 0x140   : > { %1689 = vmatprep.mubr.msk.bf16.mxu0 %vm1788_vm1, %v1787_v4 }
 0x141   : > { %1656 = vmatpush3.bf16.msra.mxu1 %v1764_v56 }
 0x142   : > { %1676 = vmatpush3.bf16.msra.mxu0 %v1765_v57  ;;  %1657 = vmatprep.subr.bf16.mxu1 %v1787_v4 }
 0x143   : > { %1677 = vmatprep.subr.bf16.mxu0 %v1787_v4 }
 0x145   : > { %1658 = vmatpush3.bf16.msra.mxu1 %v1766_v58 }
 0x146   : > { %1678 = vmatpush3.bf16.msra.mxu0 %v1767_v59  ;;  %1659 = vmatprep.subr.bf16.mxu1 %v1787_v4 }
 0x147   : > { %1679 = vmatprep.subr.bf16.mxu0 %v1787_v4 }
 0x149   : > { %1660 = vmatpush3.bf16.msra.mxu1 %v1768_v60 }
 0x14a   : > { %1680 = vmatpush3.bf16.msra.mxu0 %v1769_v61  ;;  %1661 = vmatprep.subr.bf16.mxu1 %v1787_v4 }
 0x14b   : > { %1681 = vmatprep.subr.bf16.mxu0 %v1787_v4 }
 0x14d   : > { %1662 = vmatpush3.bf16.msra.mxu1 %v1770_v62 }
 0x14e   : > { %1682 = vmatpush3.bf16.msra.mxu0 %v1771_v63  ;;  %1663 = vmatprep.subr.bf16.mxu1 %v1787_v4 }
 0x14f   : > { %1683 = vmatprep.subr.bf16.mxu0 %v1787_v4 }
 0x151   : > { %1664 = vmatpush3.bf16.msra.mxu1 %v1772_v0 }
 0x152   : > { %1684 = vmatpush3.bf16.msra.mxu0 %v1773_v1  ;;  %1665 = vmatprep.subr.bf16.mxu1 %v1787_v4 }
 0x153   : > { %1685 = vmatprep.subr.bf16.mxu0 %v1787_v4 }
 0x155   : > { %1666 = vmatpush3.bf16.msra.mxu1 %v1774_v2 }
 0x156   : > { %1686 = vmatpush3.bf16.msra.mxu0 %v1775_v3  ;;  %1667 = vmatprep.subr.bf16.mxu1 %v1787_v4 }
 0x157   : > { %1687 = vmatprep.subr.bf16.mxu0 %v1787_v4 }
 0x159   : > { %1668 = vmatpush3.bf16.msra.mxu1 %v1776_v5 }
 0x15a   : > { %1688 = vmatpush3.bf16.msra.mxu0 %v1777_v6 }
 0x15c   : > { %1670 = vmatmul.mubr.bf16.vlgmr.msra.gmra.mrb[12].mxu1 %v1959_v36 }
 0x15d   : > { %1690 = vmatmul.mubr.bf16.vlgmr.msra.gmra.mrb[28].mxu0 %v1956_v35 }
 0x1cf   : > { %v553_v7 = vpop.f32.mrb[0].mxu1 }
 0x1d0   : > { %v1551_v8 = vpop.f32.mrb[1].mxu1  ;;  %v642_v9 = vpop.f32.mrb[16].mxu0 }
 0x1d1   : > { %v643_v10 = vadd.f32 %v642_v9, %v553_v7  ;;  %v556_v11 = vpop.f32.mrb[2].mxu1  ;;  %v1571_v12 = vpop.f32.mrb[17].mxu0 }
 0x1d2   : > { %v1552_v13 = vpop.f32.mrb[3].mxu1  ;;  %v645_v14 = vpop.f32.mrb[18].mxu0 }
 0x1d3   : > { %v646_v15 = vadd.f32 %v645_v14, %v556_v11  ;;  %v1572_v16 = vpop.f32.mrb[19].mxu0 }
 0x1ef   : > { %v747_v17 = vpop.f32.mrb[4].mxu1 }
 0x1f0   : > { %v754_v18 = vadd.f32 %v747_v17, %v643_v10  ;;  %v1591_v19 = vpop.f32.mrb[5].mxu1  ;;  %v854_v4 = vpop.f32.mrb[20].mxu0 }
 0x1f1   : > { %v750_v20 = vpop.f32.mrb[6].mxu1  ;;  %v1611_v21 = vpop.f32.mrb[21].mxu0 }
 0x1f2   : > { %v861_v22 = vadd.f32 %v854_v4, %v754_v18  ;;  %v755_v23 = vadd.f32 %v750_v20, %v646_v15  ;;  %v1592_v24 = vpop.f32.mrb[7].mxu1  ;;  %v857_v25 = vpop.f32.mrb[22].mxu0 }
 0x1f3   : > { %v1612_v26 = vpop.f32.mrb[23].mxu0 }
 0x1f4   : > { %v862_v27 = vadd.f32 %v857_v25, %v755_v23 }
 0x20f   : > { %v961_v29 = vpop.f32.mrb[8].mxu1 }
 0x210   : > { %v968_v30 = vadd.f32 %v961_v29, %v861_v22  ;;  %v1631_v31 = vpop.f32.mrb[9].mxu1  ;;  %v1068_v32 = vpop.f32.mrb[24].mxu0 }
 0x211   : > { %v964_v33 = vpop.f32.mrb[10].mxu1  ;;  %v1651_v34 = vpop.f32.mrb[25].mxu0 }
 0x212   : > { %v1075_v35 = vadd.f32 %v1068_v32, %v968_v30  ;;  %v969_v36 = vadd.f32 %v964_v33, %v862_v27  ;;  %v1632_v37 = vpop.f32.mrb[11].mxu1  ;;  %v1071_v28 = vpop.f32.mrb[26].mxu0 }
 0x213   : > { %v1652_v38 = vpop.f32.mrb[27].mxu0 }
 0x214   : > { %v1076_v39 = vadd.f32 %v1071_v28, %v969_v36 }
 0x22f   : > { %v1175_v40 = vpop.f32.mrb[12].mxu1 }
 0x230   : > { %v1182_v41 = vadd.f32 %v1175_v40, %v1075_v35  ;;  %v1671_v42 = vpop.f32.mrb[13].mxu1  ;;  %v1282_v43 = vpop.f32.mrb[28].mxu0 }
 0x231   : > { %v1178_v45 = vpop.f32.mrb[14].mxu1  ;;  %v1691_v46 = vpop.f32.mrb[29].mxu0 }
 0x232   : > { %v1289_v47 = vadd.f32 %v1282_v43, %v1182_v41  ;;  %v1183_v48 = vadd.f32 %v1178_v45, %v1076_v39  ;;  %v1672_v49 = vpop.f32.mrb[15].mxu1  ;;  %v1285_v50 = vpop.f32.mrb[30].mxu0 }
 0x233   : > { %v1692_v52 = vpop.f32.mrb[31].mxu0 }
 0x234   : > { %v1293_v53 = vadd.f32 %v1291_v44, %v1289_v47  ;;  %v1290_v54 = vadd.f32 %v1285_v50, %v1183_v48 }
 0x236   : > { %1295 = vst [vmem:[%s2062_s4] sm:$0xff] %v1293_v53  ;;  %v1294_v55 = vadd.f32 %v1292_v51, %v1290_v54 }
 0x238   : > { %1296 = vst [vmem:[%s2062_s4 + $0x8] sm:$0xff] %v1294_v55 }
 0x239 PF: > { %s14_s15 = sadd.s32 1, %s1784_s15  }
 0x23a   : > { %p11_p6 = scmp.ge.s32.totalorder %s14_s15, 10  }
 0x23c   :  { %13 = sbr.rel (!%p11_p6) target bundleno = 1 (0x1), region = 69 }

</bundles_post_ra>
